<compile_context>
chip_gen: v5e
topology: v5e:2x2
jax: 0.10.0
libtpu: 0.0.40
codegen_flags: <defaults>
</compile_context>

<pallas_src>
import jax
import jax.numpy as jnp
import numpy as np
from jax.experimental import pallas as pl
from jax.experimental.pallas import tpu as pltpu

LANES = 128
MAX_BLOCK_ROWS = 2048   # (2048, 128) f32 block = 1 MiB per stream buffer
_NEG_LARGE = -1e30      # finite max sentinel: exp(m_old - m_new) never sees inf-inf


def _round_up(a, b):
    return ((a + b - 1) // b) * b


def _sparse_loss_kernel(pred_ref, targ_ref, out_ref,
                        m_sc, s_sc, tp_sc, ts_sc, ab_sc, zc_sc):
    k = pl.program_id(1)

    @pl.when(k == 0)
    def _init():
        m_sc[...] = jnp.full_like(m_sc, _NEG_LARGE)  # running max of pred      (nonzero targ)
        s_sc[...] = jnp.zeros_like(s_sc)             # running sum exp(pred-m)  (nonzero targ)
        tp_sc[...] = jnp.zeros_like(tp_sc)           # sum target * pred        (nonzero targ)
        ts_sc[...] = jnp.zeros_like(ts_sc)           # sum target               (nonzero targ)
        ab_sc[...] = jnp.zeros_like(ab_sc)           # sum |pred|               (zero targ)
        zc_sc[...] = jnp.zeros_like(zc_sc)           # count                    (zero targ + pad)

    pred = pred_ref[...].astype(jnp.float32)         # (BR, 128)
    targ = targ_ref[...].astype(jnp.float32)
    g = pred.shape[0] // 8
    pred3 = pred.reshape(g, 8, LANES)                # sublane-aligned split: free relabeling
    targ3 = targ.reshape(g, 8, LANES)

    nz = targ3 != 0.0
    nzf = nz.astype(jnp.float32)
    zf = 1.0 - nzf

    # Online logsumexp over nonzero-target positions, kept per (sublane, lane).
    m_old = m_sc[...]                                             # (8, 128)
    tile_max = jnp.max(jnp.where(nz, pred3, _NEG_LARGE), axis=0)  # vreg-wise maxes (VPU)
    m_new = jnp.maximum(m_old, tile_max)
    # Keep a *select* (not multiply-by-mask) around exp: masked-out positions
    # can produce inf and inf*0 would be NaN.
    e = jnp.where(nz, jnp.exp(pred3 - m_new[None]), 0.0)
    s_sc[...] = s_sc[...] * jnp.exp(m_old - m_new) + jnp.sum(e, axis=0)
    m_sc[...] = m_new

    # Plain masked sums (multiply-masks; padded elements have targ == pred == 0,
    # so they only inflate zc, corrected by the static pad count in the wrapper).
    tp_sc[...] = tp_sc[...] + jnp.sum(nzf * targ3 * pred3, axis=0)
    ts_sc[...] = ts_sc[...] + jnp.sum(nzf * targ3, axis=0)
    ab_sc[...] = ab_sc[...] + jnp.sum(zf * jnp.abs(pred3), axis=0)
    zc_sc[...] = zc_sc[...] + jnp.sum(zf, axis=0)

    @pl.when(k == pl.num_programs(1) - 1)
    def _writeback():
        out_ref[0, 0, :, :] = m_sc[...]
        out_ref[0, 1, :, :] = s_sc[...]
        out_ref[0, 2, :, :] = tp_sc[...]
        out_ref[0, 3, :, :] = ts_sc[...]
        out_ref[0, 4, :, :] = ab_sc[...]
        out_ref[0, 5, :, :] = zc_sc[...]


@jax.jit
def custom_sparse_loss(prediction, target):
    pred = prediction.reshape(-1)
    targ = target.reshape(-1)
    # Stream f32/bf16 at native width (upcast happens inside the kernel);
    # anything else is cast to f32 up front.
    if pred.dtype not in (jnp.float32, jnp.bfloat16):
        pred = pred.astype(jnp.float32)
    if targ.dtype not in (jnp.float32, jnp.bfloat16):
        targ = targ.astype(jnp.float32)

    n = pred.shape[0]
    rows = -(-n // LANES)

    if rows <= MAX_BLOCK_ROWS:
        n_cores = 1
        block_rows = _round_up(max(rows, 8), 8)
    else:
        n_cores = 2            # both TensorCores on v7x; harmless serial loop elsewhere
        block_rows = MAX_BLOCK_ROWS
    rows_padded = _round_up(rows, n_cores * block_rows)
    num_k = rows_padded // (n_cores * block_rows)

    n_padded = rows_padded * LANES
    pad = n_padded - n
    if pad:
        # TODO(synk): for large inputs not divisible by the block, process a
        # divisible bulk + tiny tail instead of this full-array pad copy.
        pred = jnp.pad(pred, (0, pad))
        targ = jnp.pad(targ, (0, pad))
    pred2d = pred.reshape(rows_padded, LANES)
    targ2d = targ.reshape(rows_padded, LANES)

    in_spec = pl.BlockSpec((block_rows, LANES), lambda i, k: (i * num_k + k, 0))
    parts = pl.pallas_call(
        _sparse_loss_kernel,
        out_shape=jax.ShapeDtypeStruct((n_cores, 6, 8, LANES), jnp.float32),
        grid_spec=pltpu.PrefetchScalarGridSpec(
            num_scalar_prefetch=0,
            grid=(n_cores, num_k),
            in_specs=[in_spec, in_spec],
            out_specs=pl.BlockSpec((1, 6, 8, LANES), lambda i, k: (i, 0, 0, 0)),
            scratch_shapes=[pltpu.VMEM((8, LANES), jnp.float32) for _ in range(6)],
        ),
        compiler_params=pltpu.CompilerParams(
            dimension_semantics=("parallel", "arbitrary")),
    )(pred2d, targ2d)

    # Single tiny cross-lane / cross-core combine (runs once, outside hot loop).
    m_p, s_p, tp_p, ts_p, ab_p, zc_p = (parts[:, j] for j in range(6))
    m_g = jnp.max(m_p)
    s_tot = jnp.sum(s_p * jnp.exp(m_p - m_g))
    tp_tot = jnp.sum(tp_p)
    ts_tot = jnp.sum(ts_p)
    ab_tot = jnp.sum(ab_p)
    zc_tot = jnp.sum(zc_p) - float(pad)
    # CE = -sum_nz t*(p - logsumexp) = -(sum t*p - (m + log s) * sum t)
    ce = -(tp_tot - (m_g + jnp.log(s_tot)) * ts_tot)
    mae = ab_tot / zc_tot   # NaN if no zeros in target, matching PyTorch's mean of empty
    return ce + mae


def _reference_loss(prediction, target):
    """Pure-JAX (dynamic-shape) reference matching the PyTorch module."""
    pred = jnp.asarray(prediction, jnp.float32).reshape(-1)
    targ = jnp.asarray(target, jnp.float32).reshape(-1)
    mask = targ != 0
    pn, tn = pred[mask], targ[mask]
    ce = -jnp.sum(tn * jax.nn.log_softmax(pn))      # CrossEntropyLoss, prob targets
    mae = jnp.mean(jnp.abs(pred[~mask]))            # L1 against zeros, then mean
    return ce + mae


if __name__ == "__main__":
    # Module has no learnable parameters; only inputs are needed.
    key = jax.random.PRNGKey(0)
    k1, k2, k3 = jax.random.split(key, 3)

    shape = (2, 4, 16, 16)  # NCHW-style, 2048 elements
    prediction = jax.random.normal(k1, shape, dtype=jnp.float32)
    # Target: float values (interpreted as class probabilities where nonzero),
    # with ~60% of entries exactly zero.
    values = jax.random.uniform(k2, shape, minval=0.5, maxval=1.5, dtype=jnp.float32)
    keep = jax.random.bernoulli(k3, p=0.4, shape=shape)
    target = jnp.where(keep, values, 0.0)

    out = custom_sparse_loss(prediction, target)
    out = jax.block_until_ready(out)

    ref = _reference_loss(prediction, target)
    np.testing.assert_allclose(np.asarray(out), np.asarray(ref),
                               rtol=2e-5, atol=2e-5)
    print("KERNEL_OK")
</pallas_src>

<mosaic_0001>
module attributes {stable_mosaic.version = 11 : i64} {
  func.func @_sparse_loss_kernel(%arg0: i32, %arg1: i32, %arg2: memref<16x128xf32, #tpu.memory_space<vmem>>, %arg3: memref<16x128xf32, #tpu.memory_space<vmem>>, %arg4: memref<1x6x8x128xf32, #tpu.memory_space<vmem>>, %arg5: memref<8x128xf32, #tpu.memory_space<vmem>>, %arg6: memref<8x128xf32, #tpu.memory_space<vmem>>, %arg7: memref<8x128xf32, #tpu.memory_space<vmem>>, %arg8: memref<8x128xf32, #tpu.memory_space<vmem>>, %arg9: memref<8x128xf32, #tpu.memory_space<vmem>>, %arg10: memref<8x128xf32, #tpu.memory_space<vmem>>) attributes {dimension_semantics = [#tpu.dimension_semantics<parallel>, #tpu.dimension_semantics<arbitrary>], iteration_bounds = array<i64: 1, 1>, scalar_prefetch = 0 : i64, scratch_operands = 6 : i64, tpu.core_type = #tpu.core_type<tc>, window_params = [{transform_indices = @transform_0, window_bounds = array<i64: 16, 128>}, {transform_indices = @transform_1, window_bounds = array<i64: 16, 128>}, {transform_indices = @transform_2, window_bounds = array<i64: 1, 6, 8, 128>}]} {
    %c0_i32 = arith.constant 0 : i32
    %0 = arith.cmpi eq, %arg1, %c0_i32 : i32
    %1 = arith.extui %0 : i1 to i32
    %c0_i32_0 = arith.constant 0 : i32
    %2 = arith.cmpi ne, %1, %c0_i32_0 : i32
    scf.if %2 {
      %cst_39 = arith.constant -1.000000e+30 : f32
      %56 = vector.broadcast %cst_39 : f32 to vector<8x128xf32>
      %c0_40 = arith.constant 0 : index
      %c0_41 = arith.constant 0 : index
      %57 = vector.load %arg5[%c0_40, %c0_41] : memref<8x128xf32, #tpu.memory_space<vmem>>, vector<8x128xf32>
      tpu.vector_store %arg5[%c0_40, %c0_41], %56 {strides = array<i32>} : memref<8x128xf32, #tpu.memory_space<vmem>>, vector<8x128xf32>,
      %cst_42 = arith.constant 0.000000e+00 : f32
      %58 = vector.broadcast %cst_42 : f32 to vector<8x128xf32>
      %c0_43 = arith.constant 0 : index
      %c0_44 = arith.constant 0 : index
      %59 = vector.load %arg6[%c0_43, %c0_44] : memref<8x128xf32, #tpu.memory_space<vmem>>, vector<8x128xf32>
      tpu.vector_store %arg6[%c0_43, %c0_44], %58 {strides = array<i32>} : memref<8x128xf32, #tpu.memory_space<vmem>>, vector<8x128xf32>,
      %cst_45 = arith.constant 0.000000e+00 : f32
      %60 = vector.broadcast %cst_45 : f32 to vector<8x128xf32>
      %c0_46 = arith.constant 0 : index
      %c0_47 = arith.constant 0 : index
      %61 = vector.load %arg7[%c0_46, %c0_47] : memref<8x128xf32, #tpu.memory_space<vmem>>, vector<8x128xf32>
      tpu.vector_store %arg7[%c0_46, %c0_47], %60 {strides = array<i32>} : memref<8x128xf32, #tpu.memory_space<vmem>>, vector<8x128xf32>,
      %cst_48 = arith.constant 0.000000e+00 : f32
      %62 = vector.broadcast %cst_48 : f32 to vector<8x128xf32>
      %c0_49 = arith.constant 0 : index
      %c0_50 = arith.constant 0 : index
      %63 = vector.load %arg8[%c0_49, %c0_50] : memref<8x128xf32, #tpu.memory_space<vmem>>, vector<8x128xf32>
      tpu.vector_store %arg8[%c0_49, %c0_50], %62 {strides = array<i32>} : memref<8x128xf32, #tpu.memory_space<vmem>>, vector<8x128xf32>,
      %cst_51 = arith.constant 0.000000e+00 : f32
      %64 = vector.broadcast %cst_51 : f32 to vector<8x128xf32>
      %c0_52 = arith.constant 0 : index
      %c0_53 = arith.constant 0 : index
      %65 = vector.load %arg9[%c0_52, %c0_53] : memref<8x128xf32, #tpu.memory_space<vmem>>, vector<8x128xf32>
      tpu.vector_store %arg9[%c0_52, %c0_53], %64 {strides = array<i32>} : memref<8x128xf32, #tpu.memory_space<vmem>>, vector<8x128xf32>,
      %cst_54 = arith.constant 0.000000e+00 : f32
      %66 = vector.broadcast %cst_54 : f32 to vector<8x128xf32>
      %c0_55 = arith.constant 0 : index
      %c0_56 = arith.constant 0 : index
      %67 = vector.load %arg10[%c0_55, %c0_56] : memref<8x128xf32, #tpu.memory_space<vmem>>, vector<8x128xf32>
      tpu.vector_store %arg10[%c0_55, %c0_56], %66 {strides = array<i32>} : memref<8x128xf32, #tpu.memory_space<vmem>>, vector<8x128xf32>,
    } else {
    }
    %c0 = arith.constant 0 : index
    %c0_1 = arith.constant 0 : index
    %3 = vector.load %arg2[%c0, %c0_1] : memref<16x128xf32, #tpu.memory_space<vmem>>, vector<16x128xf32>
    %c0_2 = arith.constant 0 : index
    %c0_3 = arith.constant 0 : index
    %4 = vector.load %arg3[%c0_2, %c0_3] : memref<16x128xf32, #tpu.memory_space<vmem>>, vector<16x128xf32>
    %5 = vector.shape_cast %3 : vector<16x128xf32> to vector<2x8x128xf32>
    %6 = vector.shape_cast %4 : vector<16x128xf32> to vector<2x8x128xf32>
    %cst = arith.constant 0.000000e+00 : f32
    %7 = vector.broadcast %cst : f32 to vector<2x8x128xf32>
    %8 = arith.cmpf one, %6, %7 : vector<2x8x128xf32>
    %9 = arith.extui %8 : vector<2x8x128xi1> to vector<2x8x128xi32>
    %10 = arith.sitofp %9 : vector<2x8x128xi32> to vector<2x8x128xf32>
    %cst_4 = arith.constant 1.000000e+00 : f32
    %11 = vector.broadcast %cst_4 : f32 to vector<2x8x128xf32>
    %12 = arith.subf %11, %10 : vector<2x8x128xf32>
    %c0_5 = arith.constant 0 : index
    %c0_6 = arith.constant 0 : index
    %13 = vector.load %arg5[%c0_5, %c0_6] : memref<8x128xf32, #tpu.memory_space<vmem>>, vector<8x128xf32>
    %cst_7 = arith.constant -1.000000e+30 : f32
    %14 = vector.broadcast %cst_7 : f32 to vector<2x8x128xf32>
    %15 = arith.select %8, %5, %14 : vector<2x8x128xi1>, vector<2x8x128xf32>
    %cst_8 = arith.constant dense<0xFF800000> : vector<8x128xf32>
    %16 = vector.multi_reduction <maximumf>, %15, %cst_8 [0] : vector<2x8x128xf32> to vector<8x128xf32>
    %17 = arith.maximumf %13, %16 : vector<8x128xf32>
    %18 = vector.shape_cast %17 : vector<8x128xf32> to vector<1x8x128xf32>
    %19 = vector.broadcast %18 : vector<1x8x128xf32> to vector<2x8x128xf32>
    %20 = arith.subf %5, %19 : vector<2x8x128xf32>
    %21 = math.exp %20 : vector<2x8x128xf32>
    %cst_9 = arith.constant 0.000000e+00 : f32
    %22 = vector.broadcast %cst_9 : f32 to vector<2x8x128xf32>
    %23 = arith.select %8, %21, %22 : vector<2x8x128xi1>, vector<2x8x128xf32>
    %c0_10 = arith.constant 0 : index
    %c0_11 = arith.constant 0 : index
    %24 = vector.load %arg6[%c0_10, %c0_11] : memref<8x128xf32, #tpu.memory_space<vmem>>, vector<8x128xf32>
    %25 = arith.subf %13, %17 : vector<8x128xf32>
    %26 = math.exp %25 : vector<8x128xf32>
    %27 = arith.mulf %24, %26 : vector<8x128xf32>
    %cst_12 = arith.constant dense<0.000000e+00> : vector<8x128xf32>
    %28 = vector.multi_reduction <add>, %23, %cst_12 [0] : vector<2x8x128xf32> to vector<8x128xf32>
    %29 = arith.addf %27, %28 : vector<8x128xf32>
    %c0_13 = arith.constant 0 : index
    %c0_14 = arith.constant 0 : index
    %30 = vector.load %arg6[%c0_13, %c0_14] : memref<8x128xf32, #tpu.memory_space<vmem>>, vector<8x128xf32>
    tpu.vector_store %arg6[%c0_13, %c0_14], %29 {strides = array<i32>} : memref<8x128xf32, #tpu.memory_space<vmem>>, vector<8x128xf32>,
    %c0_15 = arith.constant 0 : index
    %c0_16 = arith.constant 0 : index
    %31 = vector.load %arg5[%c0_15, %c0_16] : memref<8x128xf32, #tpu.memory_space<vmem>>, vector<8x128xf32>
    tpu.vector_store %arg5[%c0_15, %c0_16], %17 {strides = array<i32>} : memref<8x128xf32, #tpu.memory_space<vmem>>, vector<8x128xf32>,
    %c0_17 = arith.constant 0 : index
    %c0_18 = arith.constant 0 : index
    %32 = vector.load %arg7[%c0_17, %c0_18] : memref<8x128xf32, #tpu.memory_space<vmem>>, vector<8x128xf32>
    %33 = arith.mulf %10, %6 : vector<2x8x128xf32>
    %34 = arith.mulf %33, %5 : vector<2x8x128xf32>
    %cst_19 = arith.constant dense<0.000000e+00> : vector<8x128xf32>
    %35 = vector.multi_reduction <add>, %34, %cst_19 [0] : vector<2x8x128xf32> to vector<8x128xf32>
    %36 = arith.addf %32, %35 : vector<8x128xf32>
    %c0_20 = arith.constant 0 : index
    %c0_21 = arith.constant 0 : index
    %37 = vector.load %arg7[%c0_20, %c0_21] : memref<8x128xf32, #tpu.memory_space<vmem>>, vector<8x128xf32>
    tpu.vector_store %arg7[%c0_20, %c0_21], %36 {strides = array<i32>} : memref<8x128xf32, #tpu.memory_space<vmem>>, vector<8x128xf32>,
    %c0_22 = arith.constant 0 : index
    %c0_23 = arith.constant 0 : index
    %38 = vector.load %arg8[%c0_22, %c0_23] : memref<8x128xf32, #tpu.memory_space<vmem>>, vector<8x128xf32>
    %39 = arith.mulf %10, %6 : vector<2x8x128xf32>
    %cst_24 = arith.constant dense<0.000000e+00> : vector<8x128xf32>
    %40 = vector.multi_reduction <add>, %39, %cst_24 [0] : vector<2x8x128xf32> to vector<8x128xf32>
    %41 = arith.addf %38, %40 : vector<8x128xf32>
    %c0_25 = arith.constant 0 : index
    %c0_26 = arith.constant 0 : index
    %42 = vector.load %arg8[%c0_25, %c0_26] : memref<8x128xf32, #tpu.memory_space<vmem>>, vector<8x128xf32>
    tpu.vector_store %arg8[%c0_25, %c0_26], %41 {strides = array<i32>} : memref<8x128xf32, #tpu.memory_space<vmem>>, vector<8x128xf32>,
    %c0_27 = arith.constant 0 : index
    %c0_28 = arith.constant 0 : index
    %43 = vector.load %arg9[%c0_27, %c0_28] : memref<8x128xf32, #tpu.memory_space<vmem>>, vector<8x128xf32>
    %44 = math.absf %5 : vector<2x8x128xf32>
    %45 = arith.mulf %12, %44 : vector<2x8x128xf32>
    %cst_29 = arith.constant dense<0.000000e+00> : vector<8x128xf32>
    %46 = vector.multi_reduction <add>, %45, %cst_29 [0] : vector<2x8x128xf32> to vector<8x128xf32>
    %47 = arith.addf %43, %46 : vector<8x128xf32>
    %c0_30 = arith.constant 0 : index
    %c0_31 = arith.constant 0 : index
    %48 = vector.load %arg9[%c0_30, %c0_31] : memref<8x128xf32, #tpu.memory_space<vmem>>, vector<8x128xf32>
    tpu.vector_store %arg9[%c0_30, %c0_31], %47 {strides = array<i32>} : memref<8x128xf32, #tpu.memory_space<vmem>>, vector<8x128xf32>,
    %c0_32 = arith.constant 0 : index
    %c0_33 = arith.constant 0 : index
    %49 = vector.load %arg10[%c0_32, %c0_33] : memref<8x128xf32, #tpu.memory_space<vmem>>, vector<8x128xf32>
    %cst_34 = arith.constant dense<0.000000e+00> : vector<8x128xf32>
    %50 = vector.multi_reduction <add>, %12, %cst_34 [0] : vector<2x8x128xf32> to vector<8x128xf32>
    %51 = arith.addf %49, %50 : vector<8x128xf32>
    %c0_35 = arith.constant 0 : index
    %c0_36 = arith.constant 0 : index
    %52 = vector.load %arg10[%c0_35, %c0_36] : memref<8x128xf32, #tpu.memory_space<vmem>>, vector<8x128xf32>
    tpu.vector_store %arg10[%c0_35, %c0_36], %51 {strides = array<i32>} : memref<8x128xf32, #tpu.memory_space<vmem>>, vector<8x128xf32>,
    %c0_i32_37 = arith.constant 0 : i32
    %53 = arith.cmpi eq, %arg1, %c0_i32_37 : i32
    %54 = arith.extui %53 : i1 to i32
    %c0_i32_38 = arith.constant 0 : i32
    %55 = arith.cmpi ne, %54, %c0_i32_38 : i32
    scf.if %55 {
      %c0_39 = arith.constant 0 : index
      %c0_40 = arith.constant 0 : index
      %56 = vector.load %arg5[%c0_39, %c0_40] : memref<8x128xf32, #tpu.memory_space<vmem>>, vector<8x128xf32>
      %c0_41 = arith.constant 0 : index
      %c0_42 = arith.constant 0 : index
      %c0_43 = arith.constant 0 : index
      %c0_44 = arith.constant 0 : index
      %57 = vector.load %arg4[%c0_41, %c0_42, %c0_43, %c0_44] : memref<1x6x8x128xf32, #tpu.memory_space<vmem>>, vector<1x1x8x128xf32>
      %58 = vector.shape_cast %57 : vector<1x1x8x128xf32> to vector<8x128xf32>
      %59 = vector.shape_cast %56 : vector<8x128xf32> to vector<1x1x8x128xf32>
      tpu.vector_store %arg4[%c0_41, %c0_42, %c0_43, %c0_44], %59 {strides = array<i32>} : memref<1x6x8x128xf32, #tpu.memory_space<vmem>>, vector<1x1x8x128xf32>,
      %c0_45 = arith.constant 0 : index
      %c0_46 = arith.constant 0 : index
      %60 = vector.load %arg6[%c0_45, %c0_46] : memref<8x128xf32, #tpu.memory_space<vmem>>, vector<8x128xf32>
      %c0_47 = arith.constant 0 : index
      %c1 = arith.constant 1 : index
      %c0_48 = arith.constant 0 : index
      %c0_49 = arith.constant 0 : index
      %61 = vector.load %arg4[%c0_47, %c1, %c0_48, %c0_49] : memref<1x6x8x128xf32, #tpu.memory_space<vmem>>, vector<1x1x8x128xf32>
      %62 = vector.shape_cast %61 : vector<1x1x8x128xf32> to vector<8x128xf32>
      %63 = vector.shape_cast %60 : vector<8x128xf32> to vector<1x1x8x128xf32>
      tpu.vector_store %arg4[%c0_47, %c1, %c0_48, %c0_49], %63 {strides = array<i32>} : memref<1x6x8x128xf32, #tpu.memory_space<vmem>>, vector<1x1x8x128xf32>,
      %c0_50 = arith.constant 0 : index
      %c0_51 = arith.constant 0 : index
      %64 = vector.load %arg7[%c0_50, %c0_51] : memref<8x128xf32, #tpu.memory_space<vmem>>, vector<8x128xf32>
      %c0_52 = arith.constant 0 : index
      %c2 = arith.constant 2 : index
      %c0_53 = arith.constant 0 : index
      %c0_54 = arith.constant 0 : index
      %65 = vector.load %arg4[%c0_52, %c2, %c0_53, %c0_54] : memref<1x6x8x128xf32, #tpu.memory_space<vmem>>, vector<1x1x8x128xf32>
      %66 = vector.shape_cast %65 : vector<1x1x8x128xf32> to vector<8x128xf32>
      %67 = vector.shape_cast %64 : vector<8x128xf32> to vector<1x1x8x128xf32>
      tpu.vector_store %arg4[%c0_52, %c2, %c0_53, %c0_54], %67 {strides = array<i32>} : memref<1x6x8x128xf32, #tpu.memory_space<vmem>>, vector<1x1x8x128xf32>,
      %c0_55 = arith.constant 0 : index
      %c0_56 = arith.constant 0 : index
      %68 = vector.load %arg8[%c0_55, %c0_56] : memref<8x128xf32, #tpu.memory_space<vmem>>, vector<8x128xf32>
      %c0_57 = arith.constant 0 : index
      %c3 = arith.constant 3 : index
      %c0_58 = arith.constant 0 : index
      %c0_59 = arith.constant 0 : index
      %69 = vector.load %arg4[%c0_57, %c3, %c0_58, %c0_59] : memref<1x6x8x128xf32, #tpu.memory_space<vmem>>, vector<1x1x8x128xf32>
      %70 = vector.shape_cast %69 : vector<1x1x8x128xf32> to vector<8x128xf32>
      %71 = vector.shape_cast %68 : vector<8x128xf32> to vector<1x1x8x128xf32>
      tpu.vector_store %arg4[%c0_57, %c3, %c0_58, %c0_59], %71 {strides = array<i32>} : memref<1x6x8x128xf32, #tpu.memory_space<vmem>>, vector<1x1x8x128xf32>,
      %c0_60 = arith.constant 0 : index
      %c0_61 = arith.constant 0 : index
      %72 = vector.load %arg9[%c0_60, %c0_61] : memref<8x128xf32, #tpu.memory_space<vmem>>, vector<8x128xf32>
      %c0_62 = arith.constant 0 : index
      %c4 = arith.constant 4 : index
      %c0_63 = arith.constant 0 : index
      %c0_64 = arith.constant 0 : index
      %73 = vector.load %arg4[%c0_62, %c4, %c0_63, %c0_64] : memref<1x6x8x128xf32, #tpu.memory_space<vmem>>, vector<1x1x8x128xf32>
      %74 = vector.shape_cast %73 : vector<1x1x8x128xf32> to vector<8x128xf32>
      %75 = vector.shape_cast %72 : vector<8x128xf32> to vector<1x1x8x128xf32>
      tpu.vector_store %arg4[%c0_62, %c4, %c0_63, %c0_64], %75 {strides = array<i32>} : memref<1x6x8x128xf32, #tpu.memory_space<vmem>>, vector<1x1x8x128xf32>,
      %c0_65 = arith.constant 0 : index
      %c0_66 = arith.constant 0 : index
      %76 = vector.load %arg10[%c0_65, %c0_66] : memref<8x128xf32, #tpu.memory_space<vmem>>, vector<8x128xf32>
      %c0_67 = arith.constant 0 : index
      %c5 = arith.constant 5 : index
      %c0_68 = arith.constant 0 : index
      %c0_69 = arith.constant 0 : index
      %77 = vector.load %arg4[%c0_67, %c5, %c0_68, %c0_69] : memref<1x6x8x128xf32, #tpu.memory_space<vmem>>, vector<1x1x8x128xf32>
      %78 = vector.shape_cast %77 : vector<1x1x8x128xf32> to vector<8x128xf32>
      %79 = vector.shape_cast %76 : vector<8x128xf32> to vector<1x1x8x128xf32>
      tpu.vector_store %arg4[%c0_67, %c5, %c0_68, %c0_69], %79 {strides = array<i32>} : memref<1x6x8x128xf32, #tpu.memory_space<vmem>>, vector<1x1x8x128xf32>,
    } else {
    }
    return
  }
  func.func @transform_0(%arg0: i32, %arg1: i32) -> (i32, i32) {
    %c1_i32 = arith.constant 1 : i32
    %0 = arith.muli %arg0, %c1_i32 : i32
    %1 = arith.addi %0, %arg1 : i32
    %c0_i32 = arith.constant 0 : i32
    %c0_i32_0 = arith.constant 0 : i32
    return %1, %c0_i32 : i32, i32
  }
  func.func @transform_1(%arg0: i32, %arg1: i32) -> (i32, i32) {
    %c1_i32 = arith.constant 1 : i32
    %0 = arith.muli %arg0, %c1_i32 : i32
    %1 = arith.addi %0, %arg1 : i32
    %c0_i32 = arith.constant 0 : i32
    %c0_i32_0 = arith.constant 0 : i32
    return %1, %c0_i32 : i32, i32
  }
  func.func @transform_2(%arg0: i32, %arg1: i32) -> (i32, i32, i32, i32) {
    %c0_i32 = arith.constant 0 : i32
    %c0_i32_0 = arith.constant 0 : i32
    %c0_i32_1 = arith.constant 0 : i32
    %c0_i32_2 = arith.constant 0 : i32
    return %arg0, %c0_i32, %c0_i32_0, %c0_i32_1 : i32, i32, i32, i32
  }
}

</mosaic_0001>

<bundles_post_ra>
// kernel: custom_sparse_loss.1
= control target key start
LH: loop header
LB: loop body
LE: loop exit
PB: predicated region body
PF: predicated region fallthrough
CT: control target
= control target key end

     0   :  { %v173_v6 = vmov 0.0   ;;  %s225_s0 = inlined_call_operand.vmem [shape: f32[16,128], index: 0, kind: input, shape index: {}]   ;;  %s226_s1 = inlined_call_operand.vmem [shape: f32[16,128], index: 1, kind: input, shape index: {}]   ;;  %s227_s2 = inlined_call_operand.vmem [shape: f32[1,6,8,128], index: 2, kind: output, shape index: {}]  }
   0x1   :  { %v65_v0 = vld [vmem:[%s225_s0] sm:$0xff]  ;;  %v66_v1 = vld [vmem:[%s225_s0 + $0x8] sm:$0xff] }
   0x2   :  { %v67_v2 = vld [vmem:[%s226_s1] sm:$0xff]  ;;  %v68_v3 = vld [vmem:[%s226_s1 + $0x8] sm:$0xff]  ;;  %v112_v4 = vand.u32 2147483647, %v65_v0  ;;  %v113_v8 = vand.u32 2147483647, %v66_v1 }
   0x3   :  { %vm69_vm0 = vcmp.ne.f32.partialorder %v67_v2, 0.0  ;;  %vm70_vm1 = vcmp.ne.f32.partialorder %v68_v3, 0.0 }
   0x4   :  { %v78_v5 = vsel %vm69_vm0, %v65_v0, -1e+30  ;;  %v159_v7 = vsel %vm69_vm0, 1.0, %v173_v6  ;;  %v79_v9 = vsel %vm70_vm1, %v66_v1, -1e+30  ;;  %v160_v10 = vsel %vm70_vm1, 1.0, %v173_v6 }
   0x5   :  { %v100_v11 = vmul.f32 %v159_v7, %v67_v2  ;;  %v75_v12 = vsub.f32 1.0, %v159_v7  ;;  %v80_v13 = vmax.f32 %v78_v5, %v79_v9  ;;  %v101_v14 = vmul.f32 %v160_v10, %v68_v3 }
   0x6   :  { %v76_v15 = vsub.f32 1.0, %v160_v10 }
   0x7   :  { %v102_v16 = vmul.f32 %v100_v11, %v65_v0  ;;  %v114_v17 = vmul.f32 %v112_v4, %v75_v12  ;;  %v81_v18 = vmax.f32 %v80_v13, -1e+30  ;;  %v103_v19 = vmul.f32 %v101_v14, %v66_v1 }
   0x8   :  { %v108_v20 = vadd.f32 %v101_v14, %v100_v11  ;;  %v115_v21 = vmul.f32 %v113_v8, %v76_v15  ;;  %v120_v27 = vadd.f32 %v76_v15, %v75_v12 }
   0x9   :  { %127 = vst [vmem:[%s227_s2] sm:$0xff] %v81_v18  ;;  %v82_v22 = vsub.f32 %v65_v0, %v81_v18  ;;  %v83_v23 = vsub.f32 %v66_v1, %v81_v18  ;;  %v91_v24 = vsub.f32 -1e+30, %v81_v18  ;;  %v104_v25 = vadd.f32 %v103_v19, %v102_v16 }
   0xa   :  { %163 = vst [vmem:[%s227_s2 + $0x18] sm:$0xff] %v108_v20  ;;  %v116_v26 = vadd.f32 %v115_v21, %v114_v17 }
   0xb   :  { %v84_v28 = vmul.f32 1.442695, %v82_v22  ;;  %v86_v29 = vmul.f32 1.442695, %v83_v23  ;;  %v92_v30 = vmul.f32 1.442695, %v91_v24 }
   0xc   :  { %162 = vst [vmem:[%s227_s2 + $0x10] sm:$0xff] %v104_v25 }
   0xd   :  { %167 = vpow2.f32 %v84_v28  ;;  %164 = vst [vmem:[%s227_s2 + $0x20] sm:$0xff] %v116_v26 }
   0xe   :  { %169 = vpow2.f32 %v86_v29  ;;  %165 = vst [vmem:[%s227_s2 + $0x28] sm:$0xff] %v120_v27 }
   0xf   :  { %171 = vpow2.f32 %v92_v30 }
  0x13   :  { %v168_v31 = vpop.eup %167 }
  0x14   :  { %v170_v32 = vpop.eup %169  ;;  %v88_v33 = vsel %vm69_vm0, %v168_v31, 0.0 }
  0x15   :  { %v172_v34 = vpop.eup %171  ;;  %v89_v35 = vsel %vm70_vm1, %v170_v32, 0.0 }
  0x16   :  { %v94_v36 = vmul.f32 0.0, %v172_v34  ;;  %v95_v37 = vadd.f32 %v89_v35, %v88_v33 }
  0x18   :  { %v96_v38 = vadd.f32 %v95_v37, %v94_v36 }
  0x1a   :  { %161 = vst [vmem:[%s227_s2 + $0x8] sm:$0xff] %v96_v38 }

</bundles_post_ra>
